<compile_context>
chip_gen: v6e
topology: v6e:2x2x1
jax: 0.10.0
libtpu: 0.0.40
codegen_flags: <defaults>
</compile_context>

<pallas_src>
import functools
import math

import jax
import jax.numpy as jnp
from jax import lax
from jax.experimental import pallas as pl
from jax.experimental.pallas import tpu as pltpu

IN_HALF = 3          # w_i / w_o are 3-vectors
IN_DIM = 6
HIDDEN_DIM = 16
OUTPUT_DIM = 6
NEG_SLOPE = 0.01     # PyTorch nn.LeakyReLU default
_LANE = 128


def _leaky_relu(x):
    # Valid because NEG_SLOPE < 1: max(x, 0.01*x) == leaky_relu(x).
    return jnp.maximum(x, NEG_SLOPE * x)


def _ceil_to(x, m):
    return ((x + m - 1) // m) * m


def _mlp_kernel(xi_ref, xo_ref,
                w1a_ref, w1b_ref, b1_ref,
                w2_ref, b2_ref,
                w3_ref, b3_ref,
                w4_ref, b4_ref,
                o_ref, *, chunk):
    # xi_ref / xo_ref: (3, TN) lane-dense point blocks (compute dtype).
    # w*_ref: transposed weights (out, in); b*_ref: (out, 1) f32.
    tn = o_ref.shape[-1]
    n_chunks = tn // chunk

    # Hoist weight loads and bias lane-broadcasts out of the chunk loop
    # (JAX does not CSE broadcast_in_dim inside the loop body).
    w1a = w1a_ref[...]
    w1b = w1b_ref[...]
    w2 = w2_ref[...]
    w3 = w3_ref[...]
    w4 = w4_ref[...]
    b1 = jnp.broadcast_to(b1_ref[...], (HIDDEN_DIM, chunk))
    b2 = jnp.broadcast_to(b2_ref[...], (HIDDEN_DIM, chunk))
    b3 = jnp.broadcast_to(b3_ref[...], (HIDDEN_DIM, chunk))
    b4 = jnp.broadcast_to(b4_ref[...], (OUTPUT_DIM, chunk))

    def body(c, carry):
        off = pl.multiple_of(c * chunk, chunk)
        xi = xi_ref[:, pl.ds(off, chunk)]
        xo = xo_ref[:, pl.ds(off, chunk)]

        h = (jnp.dot(w1a, xi, preferred_element_type=jnp.float32)
             + jnp.dot(w1b, xo, preferred_element_type=jnp.float32)
             + b1)                                                # (16, chunk)
        h = _leaky_relu(h)

        h = jnp.dot(w2, h.astype(w2.dtype),
                    preferred_element_type=jnp.float32) + b2
        h = _leaky_relu(h)

        h = jnp.dot(w3, h.astype(w3.dtype),
                    preferred_element_type=jnp.float32) + b3
        h = _leaky_relu(h)

        out = jnp.dot(w4, h.astype(w4.dtype),
                      preferred_element_type=jnp.float32) + b4    # (6, chunk)
        o_ref[:, pl.ds(off, chunk)] = out.astype(o_ref.dtype)
        return carry

    lax.fori_loop(0, n_chunks, body, 0)


def moments_decoder_forward(w_i, w_o, params, *, tile_n=32768, inner_chunk=512,
                            compute_dtype=jnp.bfloat16):
    """w_i, w_o: (..., 3) float. Returns (..., OUTPUT_DIM) float32.

    compute_dtype: dtype fed to the MXU (jnp.bfloat16 default, or jnp.float32).
    Accumulation, bias add and LeakyReLU are always f32.  With bf16 inputs the
    typical output error vs an f32 reference is O(1e-2) absolute for O(1)
    inputs (f32 accumulate, 4 small layers).
    """
    lead_shape = w_i.shape[:-1]
    n = math.prod(lead_shape) if lead_shape else 1
    if n == 0:
        return jnp.zeros((*lead_shape, OUTPUT_DIM), jnp.float32)

    # --- Tile-size selection -------------------------------------------------
    n_ceil = _ceil_to(n, _LANE)
    tn = _ceil_to(max(int(tile_n), _LANE), _LANE)
    if n_ceil >= 2 * _LANE:
        # Ensure at least 2 grid steps so the "parallel" axis can shard across
        # the two TensorCores on v7x.
        half = _ceil_to((n_ceil + 1) // 2, _LANE)
        tn = min(tn, half)
    else:
        tn = min(tn, n_ceil)
    chunk = min(_ceil_to(max(int(inner_chunk), _LANE), _LANE), tn)
    tn = _ceil_to(tn, chunk)          # kernel chunk loop needs tn % chunk == 0
    assert tn % chunk == 0
    n_pad = _ceil_to(n, tn)

    # --- Inputs: lane-dense (3, n_pad) in compute dtype ----------------------
    # (Single wrapper transpose+cast+pad; no concatenate — first-layer weight
    #  is split instead.  These should fuse into one XLA fusion.)
    xi = w_i.reshape(n, IN_HALF).T.astype(compute_dtype)
    xo = w_o.reshape(n, IN_HALF).T.astype(compute_dtype)
    if n_pad != n:
        xi = jnp.pad(xi, ((0, 0), (0, n_pad - n)))
        xo = jnp.pad(xo, ((0, 0), (0, n_pad - n)))

    (w1, b1), (w2, b2), (w3, b3), (w4, b4) = params
    # Transposed weights (out, in); first layer split for w_i / w_o halves.
    w1a_t = w1[:IN_HALF].T.astype(compute_dtype)   # (16, 3)
    w1b_t = w1[IN_HALF:].T.astype(compute_dtype)   # (16, 3)
    w2_t = w2.T.astype(compute_dtype)              # (16, 16)
    w3_t = w3.T.astype(compute_dtype)              # (16, 16)
    w4_t = w4.T.astype(compute_dtype)              # (6, 16)
    # Biases as (out, 1) f32 columns (broadcast over lanes inside the kernel).
    b1_t = b1.T.astype(jnp.float32)
    b2_t = b2.T.astype(jnp.float32)
    b3_t = b3.T.astype(jnp.float32)
    b4_t = b4.T.astype(jnp.float32)

    grid = (n_pad // tn,)
    x_spec = pl.BlockSpec((IN_HALF, tn), lambda i: (0, i))
    out_spec = pl.BlockSpec((OUTPUT_DIM, tn), lambda i: (0, i))

    def full_spec(arr):
        # Full-extent block; constant index_map -> no per-step re-DMA.
        return pl.BlockSpec(arr.shape, lambda i: (0,) * arr.ndim)

    param_args = (w1a_t, w1b_t, b1_t, w2_t, b2_t, w3_t, b3_t, w4_t, b4_t)
    param_specs = [full_spec(p) for p in param_args]

    out = pl.pallas_call(
        functools.partial(_mlp_kernel, chunk=chunk),
        out_shape=jax.ShapeDtypeStruct((OUTPUT_DIM, n_pad), jnp.float32),
        grid_spec=pltpu.PrefetchScalarGridSpec(
            num_scalar_prefetch=0,
            grid=grid,
            in_specs=[x_spec, x_spec] + param_specs,
            out_specs=out_spec,
        ),
        compiler_params=pltpu.CompilerParams(
            dimension_semantics=("parallel",)),
    )(xi, xo, *param_args)

    out = out[:, :n].T                      # (n, 6)
    return out.reshape(*lead_shape, OUTPUT_DIM)


def init_params(key, hidden_dim=HIDDEN_DIM, output_dim=OUTPUT_DIM):
    """Deterministic synthetic init (matches nn.Linear fan-in uniform init),
    stored as (fan_in, fan_out) weights and (1, fan_out) biases."""
    dims = [(IN_DIM, hidden_dim), (hidden_dim, hidden_dim),
            (hidden_dim, hidden_dim), (hidden_dim, output_dim)]
    params = []
    for (fan_in, fan_out) in dims:
        key, kw, kb = jax.random.split(key, 3)
        scale = 1.0 / math.sqrt(fan_in)
        w = jax.random.uniform(kw, (fan_in, fan_out), jnp.float32, -scale, scale)
        b = jax.random.uniform(kb, (1, fan_out), jnp.float32, -scale, scale)
        params.append((w, b))
    return params


def _reference_forward(w_i, w_o, params):
    z = jnp.concatenate([w_i, w_o], axis=-1)
    (w1, b1), (w2, b2), (w3, b3), (w4, b4) = params
    hp = jax.lax.Precision.HIGHEST
    h = _leaky_relu(jnp.dot(z, w1, precision=hp) + b1[0])
    h = _leaky_relu(jnp.dot(h, w2, precision=hp) + b2[0])
    h = _leaky_relu(jnp.dot(h, w3, precision=hp) + b3[0])
    return jnp.dot(h, w4, precision=hp) + b4[0]


if __name__ == "__main__":
    key = jax.random.PRNGKey(0)
    k_params, k_wi, k_wo = jax.random.split(key, 3)

    params = init_params(k_params)

    # Small case: batch=2, 64 directions, 3-vectors  -> n=128, single grid step.
    w_i = jax.random.normal(k_wi, (2, 64, 3), jnp.float32)
    w_o = jax.random.normal(k_wo, (2, 64, 3), jnp.float32)
    ref = _reference_forward(w_i, w_o, params)

    # f32 MXU-input path: accurate (multi-pass f32 matmul, f32 accumulate).
    out_f32 = moments_decoder_forward(w_i, w_o, params,
                                      compute_dtype=jnp.float32)
    out_f32 = jax.block_until_ready(out_f32)
    assert out_f32.shape == (2, 64, OUTPUT_DIM), out_f32.shape
    assert jnp.allclose(out_f32, ref, atol=1e-4, rtol=1e-4), \
        float(jnp.max(jnp.abs(out_f32 - ref)))

    # Default bf16 MXU-input path.  Documented error bound: bf16 rounding of
    # inputs/weights/inter-layer activations with f32 accumulation gives
    # typical max |err| ~1e-2 and mean |err| ~few e-3 for these O(1) inputs.
    out_bf16 = moments_decoder_forward(w_i, w_o, params)
    out_bf16 = jax.block_until_ready(out_bf16)
    err = jnp.abs(out_bf16 - ref)
    assert float(jnp.mean(err)) < 1e-2, float(jnp.mean(err))
    assert jnp.allclose(out_bf16, ref, atol=5e-2, rtol=5e-2), \
        float(jnp.max(err))

    # Larger case: exercises >=2 grid steps (v7x megacore) and the in-kernel
    # 512-lane chunk loop.
    k_wi2, k_wo2 = jax.random.split(k_wi)
    w_i2 = jax.random.normal(k_wi2, (2, 1024, 3), jnp.float32)
    w_o2 = jax.random.normal(k_wo2, (2, 1024, 3), jnp.float32)
    ref2 = _reference_forward(w_i2, w_o2, params)
    out2 = moments_decoder_forward(w_i2, w_o2, params,
                                   compute_dtype=jnp.float32)
    out2 = jax.block_until_ready(out2)
    assert out2.shape == (2, 1024, OUTPUT_DIM), out2.shape
    assert jnp.allclose(out2, ref2, atol=1e-4, rtol=1e-4), \
        float(jnp.max(jnp.abs(out2 - ref2)))

    print("KERNEL_OK")
</pallas_src>

<mosaic_0001>
module attributes {stable_mosaic.version = 11 : i64} {
  func.func @_mlp_kernel(%arg0: i32, %arg1: memref<3x128xf32, #tpu.memory_space<vmem>>, %arg2: memref<3x128xf32, #tpu.memory_space<vmem>>, %arg3: memref<16x3xf32, #tpu.memory_space<vmem>>, %arg4: memref<16x3xf32, #tpu.memory_space<vmem>>, %arg5: memref<16x1xf32, #tpu.memory_space<vmem>>, %arg6: memref<16x16xf32, #tpu.memory_space<vmem>>, %arg7: memref<16x1xf32, #tpu.memory_space<vmem>>, %arg8: memref<16x16xf32, #tpu.memory_space<vmem>>, %arg9: memref<16x1xf32, #tpu.memory_space<vmem>>, %arg10: memref<6x16xf32, #tpu.memory_space<vmem>>, %arg11: memref<6x1xf32, #tpu.memory_space<vmem>>, %arg12: memref<6x128xf32, #tpu.memory_space<vmem>>) attributes {dimension_semantics = [#tpu.dimension_semantics<parallel>], iteration_bounds = array<i64: 1>, scalar_prefetch = 0 : i64, scratch_operands = 0 : i64, tpu.core_type = #tpu.core_type<tc>, window_params = [{transform_indices = @transform_0, window_bounds = array<i64: 3, 128>}, {transform_indices = @transform_1, window_bounds = array<i64: 3, 128>}, {pipeline_mode = #tpu.pipeline_mode<synchronous>, transform_indices = @transform_2, window_bounds = array<i64: 16, 3>}, {pipeline_mode = #tpu.pipeline_mode<synchronous>, transform_indices = @transform_3, window_bounds = array<i64: 16, 3>}, {pipeline_mode = #tpu.pipeline_mode<synchronous>, transform_indices = @transform_4, window_bounds = array<i64: 16, 1>}, {pipeline_mode = #tpu.pipeline_mode<synchronous>, transform_indices = @transform_5, window_bounds = array<i64: 16, 16>}, {pipeline_mode = #tpu.pipeline_mode<synchronous>, transform_indices = @transform_6, window_bounds = array<i64: 16, 1>}, {pipeline_mode = #tpu.pipeline_mode<synchronous>, transform_indices = @transform_7, window_bounds = array<i64: 16, 16>}, {pipeline_mode = #tpu.pipeline_mode<synchronous>, transform_indices = @transform_8, window_bounds = array<i64: 16, 1>}, {pipeline_mode = #tpu.pipeline_mode<synchronous>, transform_indices = @transform_9, window_bounds = array<i64: 6, 16>}, {pipeline_mode = #tpu.pipeline_mode<synchronous>, transform_indices = @transform_10, window_bounds = array<i64: 6, 1>}, {transform_indices = @transform_11, window_bounds = array<i64: 6, 128>}]} {
    %c0 = arith.constant 0 : index
    %c0_0 = arith.constant 0 : index
    %0 = vector.load %arg3[%c0, %c0_0] : memref<16x3xf32, #tpu.memory_space<vmem>>, vector<16x3xf32>
    %c0_1 = arith.constant 0 : index
    %c0_2 = arith.constant 0 : index
    %1 = vector.load %arg4[%c0_1, %c0_2] : memref<16x3xf32, #tpu.memory_space<vmem>>, vector<16x3xf32>
    %c0_3 = arith.constant 0 : index
    %c0_4 = arith.constant 0 : index
    %2 = vector.load %arg6[%c0_3, %c0_4] : memref<16x16xf32, #tpu.memory_space<vmem>>, vector<16x16xf32>
    %c0_5 = arith.constant 0 : index
    %c0_6 = arith.constant 0 : index
    %3 = vector.load %arg8[%c0_5, %c0_6] : memref<16x16xf32, #tpu.memory_space<vmem>>, vector<16x16xf32>
    %c0_7 = arith.constant 0 : index
    %c0_8 = arith.constant 0 : index
    %4 = vector.load %arg10[%c0_7, %c0_8] : memref<6x16xf32, #tpu.memory_space<vmem>>, vector<6x16xf32>
    %c0_9 = arith.constant 0 : index
    %c0_10 = arith.constant 0 : index
    %5 = vector.load %arg5[%c0_9, %c0_10] : memref<16x1xf32, #tpu.memory_space<vmem>>, vector<16x1xf32>
    %6 = vector.shape_cast %5 : vector<16x1xf32> to vector<16x1xf32>
    %7 = vector.broadcast %6 : vector<16x1xf32> to vector<16x128xf32>
    %c0_11 = arith.constant 0 : index
    %c0_12 = arith.constant 0 : index
    %8 = vector.load %arg7[%c0_11, %c0_12] : memref<16x1xf32, #tpu.memory_space<vmem>>, vector<16x1xf32>
    %9 = vector.shape_cast %8 : vector<16x1xf32> to vector<16x1xf32>
    %10 = vector.broadcast %9 : vector<16x1xf32> to vector<16x128xf32>
    %c0_13 = arith.constant 0 : index
    %c0_14 = arith.constant 0 : index
    %11 = vector.load %arg9[%c0_13, %c0_14] : memref<16x1xf32, #tpu.memory_space<vmem>>, vector<16x1xf32>
    %12 = vector.shape_cast %11 : vector<16x1xf32> to vector<16x1xf32>
    %13 = vector.broadcast %12 : vector<16x1xf32> to vector<16x128xf32>
    %c0_15 = arith.constant 0 : index
    %c0_16 = arith.constant 0 : index
    %14 = vector.load %arg11[%c0_15, %c0_16] : memref<6x1xf32, #tpu.memory_space<vmem>>, vector<6x1xf32>
    %15 = vector.shape_cast %14 : vector<6x1xf32> to vector<6x1xf32>
    %16 = vector.broadcast %15 : vector<6x1xf32> to vector<6x128xf32>
    %c0_i32 = arith.constant 0 : i32
    %c128_i32 = arith.constant 128 : i32
    %17 = arith.muli %c0_i32, %c128_i32 : i32
    %18 = tpu.assume_multiple %17, 128 : i32
    %c0_17 = arith.constant 0 : index
    %19 = arith.index_cast %18 : i32 to index
    %20 = vector.load %arg1[%c0_17, %19] : memref<3x128xf32, #tpu.memory_space<vmem>>, vector<3x128xf32>
    %c0_18 = arith.constant 0 : index
    %21 = arith.index_cast %18 : i32 to index
    %22 = vector.load %arg2[%c0_18, %21] : memref<3x128xf32, #tpu.memory_space<vmem>>, vector<3x128xf32>
    %cst = arith.constant dense<0.000000e+00> : vector<16x128xf32>
    %23 = tpu.matmul %0, %20, %cst {dimension_numbers = #tpu.dot_dimension_numbers<[1], [0], [0], [1], [0, 0, 1, 1], [], []>} : vector<16x3xf32>, vector<3x128xf32>, vector<16x128xf32> -> vector<16x128xf32>
    %cst_19 = arith.constant dense<0.000000e+00> : vector<16x128xf32>
    %24 = tpu.matmul %1, %22, %cst_19 {dimension_numbers = #tpu.dot_dimension_numbers<[1], [0], [0], [1], [0, 0, 1, 1], [], []>} : vector<16x3xf32>, vector<3x128xf32>, vector<16x128xf32> -> vector<16x128xf32>
    %25 = arith.addf %23, %24 : vector<16x128xf32>
    %26 = arith.addf %25, %7 : vector<16x128xf32>
    %cst_20 = arith.constant 0.00999999977 : f32
    %27 = vector.broadcast %cst_20 : f32 to vector<16x128xf32>
    %28 = arith.mulf %27, %26 : vector<16x128xf32>
    %29 = arith.maximumf %26, %28 : vector<16x128xf32>
    %cst_21 = arith.constant dense<0.000000e+00> : vector<16x128xf32>
    %30 = tpu.matmul %2, %29, %cst_21 {dimension_numbers = #tpu.dot_dimension_numbers<[1], [0], [0], [1], [0, 0, 1, 1], [], []>} : vector<16x16xf32>, vector<16x128xf32>, vector<16x128xf32> -> vector<16x128xf32>
    %31 = arith.addf %30, %10 : vector<16x128xf32>
    %cst_22 = arith.constant 0.00999999977 : f32
    %32 = vector.broadcast %cst_22 : f32 to vector<16x128xf32>
    %33 = arith.mulf %32, %31 : vector<16x128xf32>
    %34 = arith.maximumf %31, %33 : vector<16x128xf32>
    %cst_23 = arith.constant dense<0.000000e+00> : vector<16x128xf32>
    %35 = tpu.matmul %3, %34, %cst_23 {dimension_numbers = #tpu.dot_dimension_numbers<[1], [0], [0], [1], [0, 0, 1, 1], [], []>} : vector<16x16xf32>, vector<16x128xf32>, vector<16x128xf32> -> vector<16x128xf32>
    %36 = arith.addf %35, %13 : vector<16x128xf32>
    %cst_24 = arith.constant 0.00999999977 : f32
    %37 = vector.broadcast %cst_24 : f32 to vector<16x128xf32>
    %38 = arith.mulf %37, %36 : vector<16x128xf32>
    %39 = arith.maximumf %36, %38 : vector<16x128xf32>
    %cst_25 = arith.constant dense<0.000000e+00> : vector<6x128xf32>
    %40 = tpu.matmul %4, %39, %cst_25 {dimension_numbers = #tpu.dot_dimension_numbers<[1], [0], [0], [1], [0, 0, 1, 1], [], []>} : vector<6x16xf32>, vector<16x128xf32>, vector<6x128xf32> -> vector<6x128xf32>
    %41 = arith.addf %40, %16 : vector<6x128xf32>
    %c0_26 = arith.constant 0 : index
    %42 = arith.index_cast %18 : i32 to index
    %43 = vector.load %arg12[%c0_26, %42] : memref<6x128xf32, #tpu.memory_space<vmem>>, vector<6x128xf32>
    tpu.vector_store %arg12[%c0_26, %42], %41 {strides = array<i32>} : memref<6x128xf32, #tpu.memory_space<vmem>>, vector<6x128xf32>,
    %c1_i32 = arith.constant 1 : i32
    return
  }
  func.func @transform_0(%arg0: i32) -> (i32, i32) {
    %c0_i32 = arith.constant 0 : i32
    %c0_i32_0 = arith.constant 0 : i32
    return %c0_i32, %arg0 : i32, i32
  }
  func.func @transform_1(%arg0: i32) -> (i32, i32) {
    %c0_i32 = arith.constant 0 : i32
    %c0_i32_0 = arith.constant 0 : i32
    return %c0_i32, %arg0 : i32, i32
  }
  func.func @transform_2(%arg0: i32) -> (i32, i32) {
    %c0_i32 = arith.constant 0 : i32
    %c0_i32_0 = arith.constant 0 : i32
    %c0_i32_1 = arith.constant 0 : i32
    return %c0_i32, %c0_i32_0 : i32, i32
  }
  func.func @transform_3(%arg0: i32) -> (i32, i32) {
    %c0_i32 = arith.constant 0 : i32
    %c0_i32_0 = arith.constant 0 : i32
    %c0_i32_1 = arith.constant 0 : i32
    return %c0_i32, %c0_i32_0 : i32, i32
  }
  func.func @transform_4(%arg0: i32) -> (i32, i32) {
    %c0_i32 = arith.constant 0 : i32
    %c0_i32_0 = arith.constant 0 : i32
    %c0_i32_1 = arith.constant 0 : i32
    return %c0_i32, %c0_i32_0 : i32, i32
  }
  func.func @transform_5(%arg0: i32) -> (i32, i32) {
    %c0_i32 = arith.constant 0 : i32
    %c0_i32_0 = arith.constant 0 : i32
    %c0_i32_1 = arith.constant 0 : i32
    return %c0_i32, %c0_i32_0 : i32, i32
  }
  func.func @transform_6(%arg0: i32) -> (i32, i32) {
    %c0_i32 = arith.constant 0 : i32
    %c0_i32_0 = arith.constant 0 : i32
    %c0_i32_1 = arith.constant 0 : i32
    return %c0_i32, %c0_i32_0 : i32, i32
  }
  func.func @transform_7(%arg0: i32) -> (i32, i32) {
    %c0_i32 = arith.constant 0 : i32
    %c0_i32_0 = arith.constant 0 : i32
    %c0_i32_1 = arith.constant 0 : i32
    return %c0_i32, %c0_i32_0 : i32, i32
  }
  func.func @transform_8(%arg0: i32) -> (i32, i32) {
    %c0_i32 = arith.constant 0 : i32
    %c0_i32_0 = arith.constant 0 : i32
    %c0_i32_1 = arith.constant 0 : i32
    return %c0_i32, %c0_i32_0 : i32, i32
  }
  func.func @transform_9(%arg0: i32) -> (i32, i32) {
    %c0_i32 = arith.constant 0 : i32
    %c0_i32_0 = arith.constant 0 : i32
    %c0_i32_1 = arith.constant 0 : i32
    return %c0_i32, %c0_i32_0 : i32, i32
  }
  func.func @transform_10(%arg0: i32) -> (i32, i32) {
    %c0_i32 = arith.constant 0 : i32
    %c0_i32_0 = arith.constant 0 : i32
    %c0_i32_1 = arith.constant 0 : i32
    return %c0_i32, %c0_i32_0 : i32, i32
  }
  func.func @transform_11(%arg0: i32) -> (i32, i32) {
    %c0_i32 = arith.constant 0 : i32
    %c0_i32_0 = arith.constant 0 : i32
    return %c0_i32, %arg0 : i32, i32
  }
}

</mosaic_0001>

<bundles_post_ra>
// kernel: tpu_custom_call.1
= control target key start
LH: loop header
LB: loop body
LE: loop exit
PB: predicated region body
PF: predicated region fallthrough
CT: control target
= control target key end

     0   :  { %vm99_vm0 = vcmask 1042432   ;;  %vm92_vm1 = vcmask 23552   ;;  %s740_s0 = inlined_call_operand.vmem [shape: f32[3,128], index: 0, kind: input, shape index: {}]   ;;  %s741_s1 = inlined_call_operand.vmem [shape: f32[3,128], index: 1, kind: input, shape index: {}]   ;;  %s742_s2 = inlined_call_operand.vmem [shape: f32[16,3], index: 2, kind: input, shape index: {}]   ;;  %s743_s3 = inlined_call_operand.vmem [shape: f32[16,3], index: 3, kind: input, shape index: {}]   ;;  %s744_s4 = inlined_call_operand.vmem [shape: f32[16,1], index: 4, kind: input, shape index: {}]   ;;  %s745_s5 = inlined_call_operand.vmem [shape: f32[16,16], index: 5, kind: input, shape index: {}]   ;;  %s746_s6 = inlined_call_operand.vmem [shape: f32[16,1], index: 6, kind: input, shape index: {}]   ;;  %s747_s7 = inlined_call_operand.vmem [shape: f32[16,16], index: 7, kind: input, shape index: {}]   ;;  %s748_s8 = inlined_call_operand.vmem [shape: f32[16,1], index: 8, kind: input, shape index: {}]   ;;  %s749_s9 = inlined_call_operand.vmem [shape: f32[6,16], index: 9, kind: input, shape index: {}]   ;;  %s750_s10 = inlined_call_operand.vmem [shape: f32[6,1], index: 10, kind: input, shape index: {}]   ;;  %s751_s11 = inlined_call_operand.hbm [shape: f32[6,128], index: 11, kind: output, shape index: {}]  }
   0x1   :  { %v91_v0 = vld [vmem:[%s741_s1] sm:$0x7]  ;;  %v42_v4 = vld [vmem:[%s743_s3 + $0x8] sm:$0xff] }
   0x2   :  { %v90_v1 = vld [vmem:[%s740_s0] sm:$0x7]  ;;  %555 = vmatprep.subr.msk.mxu0 %vm99_vm0, %v91_v0  ;;  %v40_v5 = vld [vmem:[%s742_s2 + $0x8] sm:$0xff] }
   0x3   :  { %v41_v2 = vld [vmem:[%s743_s3] sm:$0xff]  ;;  %560 = vmatprep.subr.msk.mxu1 %vm99_vm0, %v90_v1  ;;  %556 = vmatpush3.msk.msra.mxu0 %vm99_vm0, %v91_v0  ;;  %v49_v6 = vld [vmem:[%s744_s4 + $0x8] sm:$0xff] }
   0x4   :  { %v39_v3 = vld [vmem:[%s742_s2] sm:$0xff]  ;;  %557 = vmatprep.mubr.msk.f32.mxu0 %vm92_vm1, %v41_v2  ;;  %561 = vmatpush3.msk.msra.mxu1 %vm99_vm0, %v90_v1 }
   0x5   :  { %562 = vmatprep.mubr.msk.f32.mxu1 %vm92_vm1, %v39_v3 }
   0x6   :  { %16 = vsyncpa [#allocation3], 0  ;;  %558 = vmatmul.mubr.msk.f32.vlgmr.msra.gmra.mxu0 %vm92_vm1, %v42_v4  ;;  %563 = vmatmul.mubr.msk.f32.vlgmr.msra.gmra.mxu1 %vm92_vm1, %v40_v5  ;;  %v614_v7 = vmov 0   ;;  %v48_v8 = vld [vmem:[%s744_s4] sm:$0xff]  ;;  %v73_v9 = vld [vmem:[%s748_s8 + $0x8] sm:$0xff]  ;;  %vm268_vm2 = vcmask 130048  }
   0x7   :  { %590 = vset.pattern.permute.xlu0 %v614_v7  ;;  %591 = vset.pattern.permute.xlu1 %v614_v7  ;;  %v84_v10 = vld [vmem:[%s750_s10] sm:$0x3f]  ;;  %v61_v12 = vld [vmem:[%s746_s6 + $0x8] sm:$0xff]  ;;  %v615_v42 = vmov 0.0   ;;  %vm616_vm3 = vmmov 0   ;;  %s617_s24 = smov [#allocation2]  }
   0x8   :  { %57 = vperm.xlu0 %590, %v49_v6   ;;  %v43_v11 = vld [vmem:[%s745_s5] sm:$0xff]  ;;  %69 = vperm.xlu1 %591, %v61_v12   ;;  %v44_v29 = vld [vmem:[%s745_s5 + $0x8] sm:$0xff]  ;;  %s519_s25 = sshll.u32 %s617_s24, 4  ;;  %s520_s25 = int_to_ptr.vmem [resolvable:$true] %s519_s25 }
   0x9   :  { %569 = vmatprep.mubr.msk.f32.mxu0 %vm268_vm2, %v43_v11  ;;  %v60_v13 = vld [vmem:[%s746_s6] sm:$0xff]  ;;  %v46_v41 = vld [vmem:[%s747_s7 + $0x8] sm:$0xff]  ;;  %s592_s26 = scalar_lea.vmem %s520_s25, 128  ;;  %p597_p1 = scmp.lt.s32.totalorder %s520_s25, %s520_s25 }
   0xa   :  { %v72_v14 = vld [vmem:[%s748_s8] sm:$0xff]  ;;  %p593_p0 = scmp.ne.s32.totalorder %s520_s25, %s592_s26  ;;  %p598_p2 = scmp.lt.s32.totalorder %s592_s26, %s592_s26 }
   0xb   :  { %v45_v30 = vld [vmem:[%s747_s7] sm:$0xff] }
   0xc   :  { %52 = vperm.xlu0 %590, %v48_v8   ;;  %64 = vperm.xlu1 %591, %v60_v13   ;;  %v47_v53 = vld [vmem:[%s749_s9] sm:$0x3f]  ;;  %p599_p3 = por %p598_p2, %p597_p1 }
   0xd   :  { %576 = vmatprep.mubr.msk.f32.mxu1 %vm268_vm2, %v45_v30 }
   0xe   :  { %p600_p4 = pnand %p599_p3, %p593_p0 }
  0x10   :  { %81 = vperm.xlu0 %590, %v73_v9   ;;  %76 = vperm.xlu1 %591, %v72_v14  }
  0x14   :  { %87 = vperm.xlu0 %590, %v84_v10  }
  0x83   :  { %v58_v15 = vpop.permute.xlu0 %57  ;;  %v70_v31 = vpop.permute.xlu1 %69 }
  0x87   :  { %v53_v23 = vpop.permute.xlu0 %52  ;;  %v65_v34 = vpop.permute.xlu1 %64 }
  0x8b   :  { %v82_v43 = vpop.permute.xlu0 %81  ;;  %v77_v46 = vpop.permute.xlu1 %76 }
  0x8f   :  { %v88_v54 = vpop.permute.xlu0 %87 }
  0xc6   :  { %v559_v16 = vpop.f32.mrf.mxu0  ;;  %v564_v17 = vpop.f32.mrf.mxu1 }
  0xc7   :  { %v259_v18 = vadd.f32 %v564_v17, %v559_v16 }
  0xc8   :  { %v169_v19 = vpop.f32.mrf.mxu0  ;;  %v253_v20 = vpop.f32.mrf.mxu1 }
  0xc9   :  { %v263_v21 = vadd.f32 %v259_v18, %v58_v15  ;;  %v254_v22 = vadd.f32 %v253_v20, %v169_v19 }
  0xcb   :  { %v265_v24 = vmul.f32 0.01, %v263_v21  ;;  %v262_v25 = vadd.f32 %v254_v22, %v53_v23 }
  0xcd   :  { %v264_v26 = vmul.f32 0.01, %v262_v25  ;;  %v267_v27 = vmax.f32 %v263_v21, %v265_v24 }
  0xcf   :  { %565 = vmatprep.subr.mxu0 %v267_v27  ;;  %v266_v28 = vmax.f32 %v262_v25, %v264_v26 }
  0xd0   :  { %566 = vmatpush3.msra.mxu0 %v267_v27 }
  0xd1   :  { %567 = vmatprep.subr.mxu0 %v266_v28 }
  0xd2   :  { %568 = vmatpush3.msra.mxu0 %v266_v28 }
  0xd3   :  { %570 = vmatmul.mubr.msk.f32.vlgmr.msra.gmra.mxu0 %vm268_vm2, %v44_v29  ;;  %579 = vmatprep.subr.mxu0 %v615_v42 }
  0xd4   :  { %583 = vmatprep.mubr.msk.f32.mxu0 %vm616_vm3, %v615_v42 }
 0x193   :  { %v571_v32 = vpop.f32.mrf.mxu0 }
 0x194   :  { %v347_v33 = vadd.f32 %v571_v32, %v70_v31 }
 0x195   :  { %v341_v35 = vpop.f32.mrf.mxu0 }
 0x196   :  { %v351_v36 = vmul.f32 0.01, %v347_v33  ;;  %v342_v37 = vadd.f32 %v341_v35, %v65_v34 }
 0x198   :  { %v353_v38 = vmax.f32 %v347_v33, %v351_v36  ;;  %v350_v39 = vmul.f32 0.01, %v342_v37 }
 0x19a   :  { %v352_v40 = vmax.f32 %v342_v37, %v350_v39  ;;  %572 = vmatprep.subr.mxu1 %v353_v38 }
 0x19b   :  { %573 = vmatpush3.msra.mxu1 %v353_v38 }
 0x19c   :  { %574 = vmatprep.subr.mxu1 %v352_v40 }
 0x19d   :  { %575 = vmatpush3.msra.mxu1 %v352_v40 }
 0x19e   :  { %577 = vmatmul.mubr.msk.f32.vlgmr.msra.gmra.mxu1 %vm268_vm2, %v46_v41 }
 0x25e   :  { %v578_v44 = vpop.f32.mrf.mxu1 }
 0x25f   :  { %v432_v45 = vadd.f32 %v578_v44, %v82_v43 }
 0x260   :  { %v426_v47 = vpop.f32.mrf.mxu1 }
 0x261   :  { %v436_v48 = vmul.f32 0.01, %v432_v45  ;;  %v427_v49 = vadd.f32 %v426_v47, %v77_v46 }
 0x263   :  { %v438_v50 = vmax.f32 %v432_v45, %v436_v48  ;;  %v435_v51 = vmul.f32 0.01, %v427_v49 }
 0x265   :  { %v437_v52 = vmax.f32 %v427_v49, %v435_v51  ;;  %580 = vmatpush3.msra.mxu0 %v438_v50 }
 0x266   :  { %581 = vmatprep.subr.mxu0 %v615_v42 }
 0x267   :  { %582 = vmatpush3.msra.mxu0 %v437_v52 }
 0x268   :  { %584 = vmatmul.mubr.msk.f32.vlgmr.msra.gmra.mxu0 %vm268_vm2, %v47_v53 }
 0x328   :  { %v508_v55 = vpop.f32.mrf.mxu0 }
 0x329   :  { %v509_v56 = vadd.f32 %v508_v55, %v88_v54 }
 0x32a   :  { %v585_v57 = vpop.f32.mrf.mxu0 }
 0x32b   :  { %512 = vst [vmem:[#allocation2] sm:$0x3f] %v509_v56 }
 0x32c   :  { %603 = shalt.err (!%p600_p4)
}
 0x32d   :  { %522 = dma.vmem_to_hbm [thread:$0]  %s520_s25, 128, %s751_s11, [#allocation3]  }
 0x32e   :  { %612 = dma.done.wait [#allocation3], 128  }
 0x32f   :  { %613 = vsyncadd [#allocation3], 4294967168 }
 0x330   :  { %526 = vsyncpa [#allocation3], 1 }

</bundles_post_ra>
